<compile_context>
chip_gen: v7x
topology: tpu7x:2x2x1
jax: 0.10.0
libtpu: 0.0.40
codegen_flags: <defaults>
</compile_context>

<pallas_src>
import math

import jax
import jax.numpy as jnp
from jax.experimental import pallas as pl
from jax.experimental.pallas import tpu as pltpu


def _round_up(x, m):
    return ((x + m - 1) // m) * m


def _make_kernel(out_dim):
    """Build the fused 3-layer MLP kernel (out_dim is static)."""

    def kernel(x_ref, w1_ref, b1_ref, w2_ref, b2_ref, w3_ref, b3_ref, o_ref):
        # Layer 1: Linear + ReLU  (bf16 operands, f32 MXU accumulation)
        h1 = jnp.dot(x_ref[...], w1_ref[...], preferred_element_type=jnp.float32)
        h1 = jnp.maximum(h1 + b1_ref[...], 0.0)
        # Layer 2: Linear + ReLU
        h2 = jnp.dot(h1.astype(w2_ref.dtype), w2_ref[...],
                     preferred_element_type=jnp.float32)
        h2 = jnp.maximum(h2 + b2_ref[...], 0.0)
        # Layer 3: Q-value head.
        if out_dim == 1:
            # w3_ref holds w3^T as a (1, hidden) f32 row.  VPU multiply +
            # XLU lane reduce — avoids an N=1 MXU pass entirely.
            q = jnp.sum(h2 * w3_ref[...], axis=-1, keepdims=True) + b3_ref[...]
            out_t = q.T                              # (1, TILE_B) lane-dense
        else:
            y = jnp.dot(h2.astype(w3_ref.dtype), w3_ref[...],
                        preferred_element_type=jnp.float32) + b3_ref[...]
            out_t = y.T                              # (out_dim, TILE_B)
        o_ref[...] = out_t[None].astype(o_ref.dtype)

    return kernel


def init_params(key, in_dim, hidden_dim, out_dim):
    """Matches the PyTorch init: xavier_uniform_(gain=calculate_gain('relu')),
    bias.fill_(0.01).  Weights stored as (in_features, out_features)."""
    gain = math.sqrt(2.0)

    def xavier_uniform(k, fan_in, fan_out):
        bound = gain * math.sqrt(6.0 / (fan_in + fan_out))
        return jax.random.uniform(k, (fan_in, fan_out), dtype=jnp.float32,
                                  minval=-bound, maxval=bound)

    k1, k2, k3 = jax.random.split(key, 3)
    return {
        "w1": xavier_uniform(k1, in_dim, hidden_dim),
        "b1": jnp.full((1, hidden_dim), 0.01, dtype=jnp.float32),
        "w2": xavier_uniform(k2, hidden_dim, hidden_dim),
        "b2": jnp.full((1, hidden_dim), 0.01, dtype=jnp.float32),
        "w3": xavier_uniform(k3, hidden_dim, out_dim),
        "b3": jnp.full((1, out_dim), 0.01, dtype=jnp.float32),
    }


def prepare_params(params, compute_dtype=jnp.bfloat16):
    """One-time host-side prep: pad in_dim to a lane-friendly K, cast the MXU
    weights to bf16 (biases stay f32), and pre-transpose w3 for the out_dim==1
    VPU path."""
    w1, b1 = params["w1"], params["b1"]
    w2, b2 = params["w2"], params["b2"]
    w3, b3 = params["w3"], params["b3"]
    in_dim, hidden = w1.shape
    out_dim = w3.shape[1]
    in_pad = _round_up(max(in_dim, 64), 64)

    w1p = jnp.zeros((in_pad, hidden), jnp.float32).at[:in_dim, :].set(w1)
    prep = {
        "in_dim": in_dim, "in_pad": in_pad, "hidden": hidden, "out_dim": out_dim,
        "compute_dtype": compute_dtype,
        "w1": w1p.astype(compute_dtype),
        "b1": b1.reshape(1, hidden).astype(jnp.float32),
        "w2": w2.astype(compute_dtype),
        "b2": b2.reshape(1, hidden).astype(jnp.float32),
        "b3": b3.reshape(1, out_dim).astype(jnp.float32),
    }
    if out_dim == 1:
        prep["w3"] = w3.T.astype(jnp.float32)   # (1, hidden) row for VPU reduce
    else:
        prep["w3"] = w3.astype(compute_dtype)   # (hidden, out_dim) for MXU
    return prep


def mlp_critic_forward(x, prep, *, max_tile_b=512):
    """x: (batch, in_dim) float32 -> (batch, out_dim) float32."""
    in_dim, in_pad = prep["in_dim"], prep["in_pad"]
    hidden, out_dim = prep["hidden"], prep["out_dim"]
    cd = prep["compute_dtype"]
    B = x.shape[0]
    assert x.shape[1] == in_dim
    assert max_tile_b % 128 == 0

    # Tile choice: single full-array block for small batches, otherwise
    # 128-aligned batch tiles (lane-legal for the transposed output).
    b8 = _round_up(B, 8)
    tile_b = b8 if b8 <= max_tile_b else max_tile_b
    b_pad = _round_up(B, tile_b)
    num_tiles = b_pad // tile_b

    xp = jnp.pad(x, ((0, b_pad - B), (0, in_pad - in_dim))).astype(cd)

    w1p, b1p = prep["w1"], prep["b1"]
    w2p, b2p = prep["w2"], prep["b2"]
    w3p, b3p = prep["w3"], prep["b3"]

    flops = 2 * b_pad * (in_pad * hidden + hidden * hidden + hidden * out_dim)
    bytes_accessed = int(
        xp.size * xp.dtype.itemsize
        + sum(int(a.size) * a.dtype.itemsize
              for a in (w1p, b1p, w2p, b2p, w3p, b3p))
        + num_tiles * out_dim * tile_b * 4)

    const2 = lambda i: (0, 0)
    out_t = pl.pallas_call(
        _make_kernel(out_dim),
        out_shape=jax.ShapeDtypeStruct((num_tiles, out_dim, tile_b), jnp.float32),
        grid=(num_tiles,),
        in_specs=[
            pl.BlockSpec((tile_b, in_pad), lambda i: (i, 0)),   # x: batch-tiled
            pl.BlockSpec((in_pad, hidden), const2),             # w1 (resident)
            pl.BlockSpec((1, hidden), const2),                  # b1
            pl.BlockSpec((hidden, hidden), const2),             # w2
            pl.BlockSpec((1, hidden), const2),                  # b2
            pl.BlockSpec(tuple(w3p.shape), const2),             # w3 / w3^T
            pl.BlockSpec((1, out_dim), const2),                 # b3
        ],
        out_specs=pl.BlockSpec((1, out_dim, tile_b), lambda i: (i, 0, 0)),
        compiler_params=pltpu.CompilerParams(
            dimension_semantics=("parallel",),
            vmem_limit_bytes=32 * 1024 * 1024),
        cost_estimate=pl.CostEstimate(
            flops=flops, transcendentals=0, bytes_accessed=bytes_accessed),
    )(xp, w1p, b1p, w2p, b2p, w3p, b3p)

    # (num_tiles, out_dim, tile_b) -> (B, out_dim): lane-dense result back to
    # the PyTorch row-major layout.
    out = out_t.transpose(1, 0, 2).reshape(out_dim, b_pad)[:, :B].T
    return out


def reference_forward(x, params, compute_dtype=jnp.bfloat16):
    """Plain-JAX forward at the same operand precision as the kernel."""
    cd = compute_dtype
    h1 = jnp.maximum(jnp.dot(x.astype(cd), params["w1"].astype(cd),
                             preferred_element_type=jnp.float32) + params["b1"], 0.0)
    h2 = jnp.maximum(jnp.dot(h1.astype(cd), params["w2"].astype(cd),
                             preferred_element_type=jnp.float32) + params["b2"], 0.0)
    return jnp.dot(h2, params["w3"], preferred_element_type=jnp.float32) + params["b3"]


if __name__ == "__main__":
    # Critic input = concat of all agents' observations + actions (flat vector).
    batch = 8
    in_dim = 48        # e.g. global obs + joint actions
    hidden_dim = 64    # module default
    out_dim = 1        # scalar Q-value

    key = jax.random.PRNGKey(0)
    k_x, k_p, k_x2 = jax.random.split(key, 3)
    x = jax.random.normal(k_x, (batch, in_dim), dtype=jnp.float32)
    params = init_params(k_p, in_dim, hidden_dim, out_dim)
    prep = prepare_params(params, compute_dtype=jnp.bfloat16)

    # Small batch: single tile, whole problem resident in VMEM.
    out = jax.block_until_ready(mlp_critic_forward(x, prep))
    ref = reference_forward(x, params)
    assert out.shape == (batch, out_dim)
    assert jnp.allclose(out, ref, atol=1e-3, rtol=1e-3), (
        float(jnp.max(jnp.abs(out - ref))))

    # Larger, non-multiple batch: exercises the batch grid (3 tiles of 128)
    # with resident weights and the lane-dense transposed output path.
    x2 = jax.random.normal(k_x2, (300, in_dim), dtype=jnp.float32)
    out2 = jax.block_until_ready(mlp_critic_forward(x2, prep, max_tile_b=128))
    ref2 = reference_forward(x2, params)
    assert out2.shape == (300, out_dim)
    assert jnp.allclose(out2, ref2, atol=1e-3, rtol=1e-3), (
        float(jnp.max(jnp.abs(out2 - ref2))))

    # TODO(synk): save_checkpoint / load_checkpoint are host-side torch file I/O
    # and have no kernel equivalent.
    print("KERNEL_OK")
</pallas_src>

<mosaic_0001>
module attributes {stable_mosaic.version = 11 : i64} {
  func.func @kernel(%arg0: i32, %arg1: memref<8x64xbf16, #tpu.memory_space<vmem>>, %arg2: memref<64x64xbf16, #tpu.memory_space<vmem>>, %arg3: memref<1x64xf32, #tpu.memory_space<vmem>>, %arg4: memref<64x64xbf16, #tpu.memory_space<vmem>>, %arg5: memref<1x64xf32, #tpu.memory_space<vmem>>, %arg6: memref<1x64xf32, #tpu.memory_space<vmem>>, %arg7: memref<1x1xf32, #tpu.memory_space<vmem>>, %arg8: memref<1x1x8xf32, #tpu.memory_space<vmem>>) attributes {dimension_semantics = [#tpu.dimension_semantics<parallel>], iteration_bounds = array<i64: 1>, scalar_prefetch = 0 : i64, scratch_operands = 0 : i64, tpu.core_type = #tpu.core_type<tc>, window_params = [{transform_indices = @transform_0, window_bounds = array<i64: 8, 64>}, {pipeline_mode = #tpu.pipeline_mode<synchronous>, transform_indices = @transform_1, window_bounds = array<i64: 64, 64>}, {pipeline_mode = #tpu.pipeline_mode<synchronous>, transform_indices = @transform_2, window_bounds = array<i64: 1, 64>}, {pipeline_mode = #tpu.pipeline_mode<synchronous>, transform_indices = @transform_3, window_bounds = array<i64: 64, 64>}, {pipeline_mode = #tpu.pipeline_mode<synchronous>, transform_indices = @transform_4, window_bounds = array<i64: 1, 64>}, {pipeline_mode = #tpu.pipeline_mode<synchronous>, transform_indices = @transform_5, window_bounds = array<i64: 1, 64>}, {pipeline_mode = #tpu.pipeline_mode<synchronous>, transform_indices = @transform_6, window_bounds = array<i64: 1, 1>}, {transform_indices = @transform_7, window_bounds = array<i64: 1, 1, 8>}]} {
    %c0 = arith.constant 0 : index
    %c0_0 = arith.constant 0 : index
    %0 = vector.load %arg1[%c0, %c0_0] : memref<8x64xbf16, #tpu.memory_space<vmem>>, vector<8x64xbf16>
    %c0_1 = arith.constant 0 : index
    %c0_2 = arith.constant 0 : index
    %1 = vector.load %arg2[%c0_1, %c0_2] : memref<64x64xbf16, #tpu.memory_space<vmem>>, vector<64x64xbf16>
    %cst = arith.constant dense<0.000000e+00> : vector<8x64xf32>
    %2 = tpu.matmul %0, %1, %cst {dimension_numbers = #tpu.dot_dimension_numbers<[1], [0], [0], [1], [0, 0, 1, 1], [], []>} : vector<8x64xbf16>, vector<64x64xbf16>, vector<8x64xf32> -> vector<8x64xf32>
    %c0_3 = arith.constant 0 : index
    %c0_4 = arith.constant 0 : index
    %3 = vector.load %arg3[%c0_3, %c0_4] : memref<1x64xf32, #tpu.memory_space<vmem>>, vector<1x64xf32>
    %4 = vector.broadcast %3 : vector<1x64xf32> to vector<8x64xf32>
    %5 = arith.addf %2, %4 : vector<8x64xf32>
    %cst_5 = arith.constant 0.000000e+00 : f32
    %6 = vector.broadcast %cst_5 : f32 to vector<8x64xf32>
    %7 = arith.maximumf %5, %6 : vector<8x64xf32>
    %8 = arith.truncf %7 : vector<8x64xf32> to vector<8x64xbf16>
    %c0_6 = arith.constant 0 : index
    %c0_7 = arith.constant 0 : index
    %9 = vector.load %arg4[%c0_6, %c0_7] : memref<64x64xbf16, #tpu.memory_space<vmem>>, vector<64x64xbf16>
    %cst_8 = arith.constant dense<0.000000e+00> : vector<8x64xf32>
    %10 = tpu.matmul %8, %9, %cst_8 {dimension_numbers = #tpu.dot_dimension_numbers<[1], [0], [0], [1], [0, 0, 1, 1], [], []>} : vector<8x64xbf16>, vector<64x64xbf16>, vector<8x64xf32> -> vector<8x64xf32>
    %c0_9 = arith.constant 0 : index
    %c0_10 = arith.constant 0 : index
    %11 = vector.load %arg5[%c0_9, %c0_10] : memref<1x64xf32, #tpu.memory_space<vmem>>, vector<1x64xf32>
    %12 = vector.broadcast %11 : vector<1x64xf32> to vector<8x64xf32>
    %13 = arith.addf %10, %12 : vector<8x64xf32>
    %cst_11 = arith.constant 0.000000e+00 : f32
    %14 = vector.broadcast %cst_11 : f32 to vector<8x64xf32>
    %15 = arith.maximumf %13, %14 : vector<8x64xf32>
    %c0_12 = arith.constant 0 : index
    %c0_13 = arith.constant 0 : index
    %16 = vector.load %arg6[%c0_12, %c0_13] : memref<1x64xf32, #tpu.memory_space<vmem>>, vector<1x64xf32>
    %17 = vector.broadcast %16 : vector<1x64xf32> to vector<8x64xf32>
    %18 = arith.mulf %15, %17 : vector<8x64xf32>
    %cst_14 = arith.constant dense<0.000000e+00> : vector<8xf32>
    %19 = vector.multi_reduction <add>, %18, %cst_14 [1] : vector<8x64xf32> to vector<8xf32>
    %20 = vector.shape_cast %19 : vector<8xf32> to vector<8x1xf32>
    %c0_15 = arith.constant 0 : index
    %c0_16 = arith.constant 0 : index
    %21 = vector.load %arg7[%c0_15, %c0_16] : memref<1x1xf32, #tpu.memory_space<vmem>>, vector<1x1xf32>
    %22 = vector.broadcast %21 : vector<1x1xf32> to vector<8x1xf32>
    %23 = arith.addf %20, %22 : vector<8x1xf32>
    %24 = tpu.transpose %23, [1, 0] : vector<8x1xf32> -> vector<1x8xf32>
    %25 = vector.shape_cast %24 : vector<1x8xf32> to vector<1x1x8xf32>
    %c0_17 = arith.constant 0 : index
    %c0_18 = arith.constant 0 : index
    %c0_19 = arith.constant 0 : index
    %26 = vector.load %arg8[%c0_17, %c0_18, %c0_19] : memref<1x1x8xf32, #tpu.memory_space<vmem>>, vector<1x1x8xf32>
    tpu.vector_store %arg8[%c0_17, %c0_18, %c0_19], %25 {strides = array<i32>} : memref<1x1x8xf32, #tpu.memory_space<vmem>>, vector<1x1x8xf32>,
    return
  }
  func.func @transform_0(%arg0: i32) -> (i32, i32) {
    %c0_i32 = arith.constant 0 : i32
    %c0_i32_0 = arith.constant 0 : i32
    return %arg0, %c0_i32 : i32, i32
  }
  func.func @transform_1(%arg0: i32) -> (i32, i32) {
    %c0_i32 = arith.constant 0 : i32
    %c0_i32_0 = arith.constant 0 : i32
    %c0_i32_1 = arith.constant 0 : i32
    return %c0_i32, %c0_i32_0 : i32, i32
  }
  func.func @transform_2(%arg0: i32) -> (i32, i32) {
    %c0_i32 = arith.constant 0 : i32
    %c0_i32_0 = arith.constant 0 : i32
    %c0_i32_1 = arith.constant 0 : i32
    return %c0_i32, %c0_i32_0 : i32, i32
  }
  func.func @transform_3(%arg0: i32) -> (i32, i32) {
    %c0_i32 = arith.constant 0 : i32
    %c0_i32_0 = arith.constant 0 : i32
    %c0_i32_1 = arith.constant 0 : i32
    return %c0_i32, %c0_i32_0 : i32, i32
  }
  func.func @transform_4(%arg0: i32) -> (i32, i32) {
    %c0_i32 = arith.constant 0 : i32
    %c0_i32_0 = arith.constant 0 : i32
    %c0_i32_1 = arith.constant 0 : i32
    return %c0_i32, %c0_i32_0 : i32, i32
  }
  func.func @transform_5(%arg0: i32) -> (i32, i32) {
    %c0_i32 = arith.constant 0 : i32
    %c0_i32_0 = arith.constant 0 : i32
    %c0_i32_1 = arith.constant 0 : i32
    return %c0_i32, %c0_i32_0 : i32, i32
  }
  func.func @transform_6(%arg0: i32) -> (i32, i32) {
    %c0_i32 = arith.constant 0 : i32
    %c0_i32_0 = arith.constant 0 : i32
    %c0_i32_1 = arith.constant 0 : i32
    return %c0_i32, %c0_i32_0 : i32, i32
  }
  func.func @transform_7(%arg0: i32) -> (i32, i32, i32) {
    %c0_i32 = arith.constant 0 : i32
    %c0_i32_0 = arith.constant 0 : i32
    %c0_i32_1 = arith.constant 0 : i32
    return %arg0, %c0_i32, %c0_i32_0 : i32, i32, i32
  }
}

</mosaic_0001>

<bundles_post_ra>
// kernel: tpu_custom_call.1
= control target key start
LH: loop header
LB: loop body
LE: loop exit
PB: predicated region body
PF: predicated region fallthrough
CT: control target
= control target key end

     0   :  { %s582_s0 = inlined_call_operand.hbm [shape: bf16[8,64], index: 0, kind: input, shape index: {}]   ;;  %s583_s1 = inlined_call_operand.hbm [shape: bf16[64,64], index: 1, kind: input, shape index: {}]   ;;  %s584_s2 = inlined_call_operand.vmem [shape: f32[1,64], index: 2, kind: input, shape index: {}]   ;;  %s585_s3 = inlined_call_operand.hbm [shape: bf16[64,64], index: 3, kind: input, shape index: {}]   ;;  %s586_s4 = inlined_call_operand.vmem [shape: f32[1,64], index: 4, kind: input, shape index: {}]   ;;  %s587_s5 = inlined_call_operand.vmem [shape: f32[1,64], index: 5, kind: input, shape index: {}]   ;;  %s588_s6 = inlined_call_operand.<no memory space> [shape: f32[1,1], index: 6, kind: input, shape index: {}]   ;;  %s589_s7 = inlined_call_operand.hbm [shape: f32[1,1,8], index: 7, kind: output, shape index: {}]  }
   0x1   :  { %v12_v0 = vstv %s588_s6 }
   0x2   :  { %13 = vst [vmem:[#allocation2] sm:$0x1] %v12_v0 }
   0x3   :  { %14 = vsyncpa [#allocation4], 0 }
   0x4   :  { %15 = vsyncpa [#allocation7], 0 }
   0x5   :  { %16 = vsyncpa [#allocation5], 0  ;;  %s465_s26 = smov [#allocation6]   ;;  %s371_s30 = scalar_lea.hbm %s583_s1, 512 }
   0x6   :  { %s32_s27 = sshll.u32 %s465_s26, 4  ;;  %p372_p0 = scmp.ne.s32.totalorder %s583_s1, %s371_s30  ;;  %s33_s27 = int_to_ptr.vmem [resolvable:$true] %s32_s27 }
   0x7   :  { %p375_p1 = scmp.lt.u32.totalorder %s371_s30, %s583_s1 }
   0x9   :  { %p377_p2 = pnand %p375_p1, %p372_p0 }
   0xb   :  { %380 = shalt.err (!%p377_p2)
}
   0xc   :  { %s381_s6 = scalar_lea.vmem %s33_s27, 512  ;;  %p386_p4 = scmp.lt.s32.totalorder %s33_s27, %s33_s27 }
   0xd   :  { %p382_p3 = scmp.ne.s32.totalorder %s33_s27, %s381_s6  ;;  %p387_p5 = scmp.lt.s32.totalorder %s381_s6, %s381_s6 }
   0xf   :  { %p388_p6 = por %p387_p5, %p386_p4 }
  0x11   :  { %p389_p7 = pnand %p388_p6, %p382_p3 }
  0x13   :  { %392 = shalt.err (!%p389_p7)
}
  0x14   :  { %s466_s12 = smov 64   ;;  %s467_s13 = smov 4  }
  0x15   :  { %38 = dma.hbm_to_vmem [thread:$0]  %s583_s1, 512, %s33_s27, [#allocation7], %s466_s12, %s466_s12, %s467_s13  }
  0x16   :  { %s468_s16 = smov [#allocation3]   ;;  %s469_s18 = smov [#allocation8]  }
  0x17   :  { %s23_s17 = sshll.u32 %s468_s16, 4  ;;  %s46_s19 = sshll.u32 %s469_s18, 4  ;;  %s24_s17 = int_to_ptr.vmem [resolvable:$true] %s23_s17  ;;  %s47_s19 = int_to_ptr.vmem [resolvable:$true] %s46_s19 }
  0x18   :  { %s393_s22 = scalar_lea.hbm %s582_s0, 64 }
  0x19   :  { %p394_p8 = scmp.ne.s32.totalorder %s582_s0, %s393_s22  ;;  %p397_p9 = scmp.lt.u32.totalorder %s393_s22, %s582_s0 }
  0x1b   :  { %p399_p10 = pnand %p397_p9, %p394_p8 }
  0x1d   :  { %402 = shalt.err (!%p399_p10)
}
  0x1e   :  { %s403_s1 = scalar_lea.vmem %s24_s17, 64  ;;  %p408_p12 = scmp.lt.s32.totalorder %s24_s17, %s24_s17 }
  0x1f   :  { %p404_p11 = scmp.ne.s32.totalorder %s24_s17, %s403_s1  ;;  %p409_p13 = scmp.lt.s32.totalorder %s403_s1, %s403_s1 }
  0x21   :  { %p410_p0 = por %p409_p13, %p408_p12 }
  0x23   :  { %p411_p1 = pnand %p410_p0, %p404_p11 }
  0x25   :  { %414 = shalt.err (!%p411_p1)
}
  0x26   :  { %26 = dma.hbm_to_vmem [thread:$0]  %s582_s0, 64, %s24_s17, [#allocation4]  }
  0x27   :  { %s415_s8 = scalar_lea.hbm %s585_s3, 512 }
  0x28   :  { %p416_p2 = scmp.ne.s32.totalorder %s585_s3, %s415_s8  ;;  %p419_p3 = scmp.lt.u32.totalorder %s415_s8, %s585_s3 }
  0x2a   :  { %p421_p4 = pnand %p419_p3, %p416_p2 }
  0x2c   :  { %424 = shalt.err (!%p421_p4)
}
  0x2d   :  { %s425_s14 = scalar_lea.vmem %s47_s19, 512  ;;  %p430_p6 = scmp.lt.s32.totalorder %s47_s19, %s47_s19 }
  0x2e   :  { %p426_p5 = scmp.ne.s32.totalorder %s47_s19, %s425_s14  ;;  %p431_p7 = scmp.lt.s32.totalorder %s425_s14, %s425_s14 }
  0x30   :  { %p432_p8 = por %p431_p7, %p430_p6 }
  0x32   :  { %p433_p9 = pnand %p432_p8, %p426_p5 }
  0x34   :  { %436 = shalt.err (!%p433_p9)
}
  0x35   :  { %52 = dma.hbm_to_vmem [thread:$0]  %s585_s3, 512, %s47_s19, [#allocation7], %s466_s12, %s466_s12, %s467_s13  }
  0x36   :  { %459 = dma.done.wait [#allocation4], 64  }
  0x37   :  { %460 = vsyncadd [#allocation4], 4294967232 }
  0x38   :  { %461 = dma.done.wait [#allocation7], 1024  }
  0x39   :  { %462 = vsyncadd [#allocation7], 4294966272  ;;  %v470_v1 = vmov 0.0   ;;  %vm471_vm0 = vmmov 0   ;;  %v363_v2 = vld [vmem:[#allocation6] sm:$0xff]   ;;  %v364_v3 = vld [vmem:[#allocation6 + $0x8] sm:$0xff]  }
  0x3a   :  { %331 = vmatprep.subr.bf16.mxu0 %v470_v1  ;;  %339 = vmatprep.mubr.msk.bf16.mxu0 %vm471_vm0, %v470_v1  ;;  %v367_v4 = vld [vmem:[#allocation8] sm:$0xff]   ;;  %v365_v5 = vld [vmem:[#allocation6 + $0x10] sm:$0xff]   ;;  %v368_v6 = vld [vmem:[#allocation8 + $0x8] sm:$0xff]   ;;  %vm109_vm1 = vcmask 523264   ;;  %vm289_vm2 = vcmask 57344  }
  0x3b   :  { %343 = vmatprep.subr.bf16.mxu1 %v470_v1  ;;  %351 = vmatprep.mubr.msk.bf16.mxu1 %vm471_vm0, %v470_v1  ;;  %v366_v7 = vld [vmem:[#allocation6 + $0x18] sm:$0xff]   ;;  %v369_v9 = vld [vmem:[#allocation8 + $0x10] sm:$0xff]  }
  0x3c   :  { %332 = vmatpush3.bf16.msra.mxu0 %v363_v2  ;;  %344 = vmatpush3.bf16.msra.mxu1 %v367_v4  ;;  %v69_v8 = vld [vmem:[#allocation3] sm:$0xf]  ;;  %v307_v11 = vld [vmem:[%s584_s2] ss:$0 sm:$0xff]  ;;  %s472_s2 = smov [#allocation9]  }
  0x3d   :  { %333 = vmatprep.subr.bf16.mxu0 %v470_v1  ;;  %345 = vmatprep.subr.bf16.mxu1 %v470_v1  ;;  %v370_v10 = vld [vmem:[#allocation8 + $0x18] sm:$0xff]  }
  0x3e   :  { %v313_v19 = vld [vmem:[%s586_s4] ss:$0 sm:$0xff]  ;;  %s297_s4 = sshll.u32 %s472_s2, 4  ;;  %s298_s4 = int_to_ptr.vmem [resolvable:$true] %s297_s4 }
  0x3f   :  { %v319_v24 = vld [vmem:[%s587_s5] ss:$0 sm:$0xff]  ;;  %s437_s19 = scalar_lea.vmem %s298_s4, 16  ;;  %s441_s20 = scalar_lea.vmem %s298_s4, 32 }
  0x40   :  { %334 = vmatpush3.bf16.msra.mxu0 %v364_v3  ;;  %346 = vmatpush3.bf16.msra.mxu1 %v368_v6  ;;  %v320_v29 = vld [vmem:[#allocation2] ss:$0 sm:$0xff]  ;;  %p438_p10 = scmp.ne.s32.totalorder %s298_s4, %s437_s19  ;;  %p442_p11 = scmp.lt.s32.totalorder %s298_s4, %s298_s4 }
  0x41   :  { %335 = vmatprep.subr.bf16.mxu0 %v470_v1  ;;  %347 = vmatprep.subr.bf16.mxu1 %v470_v1  ;;  %p443_p12 = scmp.lt.s32.totalorder %s441_s20, %s437_s19 }
  0x43   :  { %p444_p13 = por %p443_p12, %p442_p11 }
  0x44   :  { %336 = vmatpush3.bf16.msra.mxu0 %v365_v5  ;;  %348 = vmatpush3.bf16.msra.mxu1 %v369_v9 }
  0x45   :  { %337 = vmatprep.subr.bf16.mxu0 %v470_v1  ;;  %349 = vmatprep.subr.bf16.mxu1 %v470_v1  ;;  %p445_p0 = pnand %p444_p13, %p438_p10 }
  0x48   :  { %338 = vmatpush3.bf16.msra.mxu0 %v366_v7  ;;  %350 = vmatpush3.bf16.msra.mxu1 %v370_v10 }
  0x4b   :  { %340 = vmatmul.mubr.msk.bf16.vlgmr.msra.gmra.mrb[0].mxu0 %vm109_vm1, %v69_v8 }
 0x11e   :  { %v147_v12 = vpop.f32.mrb[0].mxu0 }
 0x11f   :  { %v148_v13 = vadd.f32 %v307_v11, %v147_v12  ;;  %v341_v14 = vpop.f32.mrb[1].mxu0 }
 0x120   :  { %v150_v15 = vpop.f32.mrb[2].mxu0 }
 0x121   :  { %v153_v16 = vmax.f32 %v148_v13, 0.0  ;;  %v342_v17 = vpop.f32.mrb[3].mxu0 }
 0x123   :  { %v154_v18 = vpack.c.bf16 %v153_v16, %v153_v16 }
 0x125   :  { %352 = vmatmul.mubr.msk.bf16.vlgmr.msra.gmra.mrb[0].mxu1 %vm109_vm1, %v154_v18 }
 0x1f8   :  { %v231_v20 = vpop.f32.mrb[0].mxu1 }
 0x1f9   :  { %v232_v21 = vadd.f32 %v313_v19, %v231_v20  ;;  %v353_v22 = vpop.f32.mrb[1].mxu1 }
 0x1fa   :  { %v234_v23 = vpop.f32.mrb[2].mxu1 }
 0x1fb   :  { %v237_v25 = vmax.f32 %v232_v21, 0.0  ;;  %v354_v26 = vpop.f32.mrb[3].mxu1 }
 0x1fd   :  { %v245_v27 = vmul.f32 %v319_v24, %v237_v25 }
 0x1ff   :  { %v246_v28 = vsel %vm109_vm1, %v245_v27, 0.0 }
 0x200   :  { %247 = vadd.xlane.f32.xlu0 %v246_v28 }
 0x28d   :  { %v248_v30 = vpop.xlane.xlu0 %247 }
 0x28e   :  { %v256_v31 = vadd.f32 %v320_v29, %v248_v30 }
 0x290   :  { %257 = vxpose.xlu0.b32.start.end [1/1] (short) (narrow) %v256_v31, 8 }
 0x310   :  { %v273_v32 = vpop.trf.xlu0 }
 0x311   :  { %290 = vst.msk [vmem:[#allocation9] sm:$0x1] %vm289_vm2, %v273_v32 }
 0x312   :  { %448 = shalt.err (!%p445_p0)
}
 0x313   :  { %s449_s22 = scalar_lea.hbm %s589_s7, 16 }
 0x314   :  { %p450_p1 = scmp.ne.s32.totalorder %s589_s7, %s449_s22  ;;  %p453_p2 = scmp.lt.u32.totalorder %s449_s22, %s589_s7 }
 0x316   :  { %p455_p3 = pnand %p453_p2, %p450_p1 }
 0x318   :  { %458 = shalt.err (!%p455_p3)
}
 0x319   :  { %300 = dma.vmem_to_hbm [thread:$0]  %s298_s4, 16, %s589_s7, [#allocation5]  }
 0x31a   :  { %463 = dma.done.wait [#allocation5], 16  }
 0x31b   :  { %464 = vsyncadd [#allocation5], 4294967280 }
 0x31c   :  { %304 = vsyncpa [#allocation4], 1 }
 0x31d   :  { %305 = vsyncpa [#allocation7], 1 }
 0x31e   :  { %306 = vsyncpa [#allocation5], 1 }

</bundles_post_ra>
